<compile_context>
chip_gen: v7x
topology: tpu7x:2x2x1
jax: 0.10.0
libtpu: 0.0.40
codegen_flags: <defaults>
</compile_context>

<pallas_src>
import jax
import jax.numpy as jnp
from jax.experimental import pallas as pl
from jax.experimental.pallas import tpu as pltpu

_LANES = 128          # TPU vreg lane count
_BLOCK_ROWS = 2048    # (rows, 128) rows per grid step  (~1 MiB f32 per buffer)


def _dpr_collate_kernel(rem_ref, raw_ref, mask_ref, scores_ref):
    """Elementwise over the row-major flattened [B*C] view, tiled (rows, 128).

    rem_ref    : int8/int32 [R, 128]  num_real[row] - slot  (>0 on real slots)
    raw_ref    : f32/bf16   [R, 128]  raw per-slot scores (garbage on pad slots)
    mask_ref   : int8       [R, 128]  out: 1 where the slot is a fake/pad ctx
    scores_ref : float32    [R, 128]  out: raw score, or 0.0 on pad slots
    """
    pad = rem_ref[...].astype(jnp.int32) <= 0
    mask_ref[...] = pad.astype(jnp.int8)
    # padded fake contexts were appended with {'score': 0}
    scores_ref[...] = jnp.where(pad, 0.0, raw_ref[...].astype(jnp.float32))


def _round_up(x, m):
    return ((x + m - 1) // m) * m


@jax.jit
def dpr_collate(num_neg_available, raw_scores):
    """Returns (pos_ctx_indices [B] i32, scores [B, C] f32, ctx_mask [B*C] bool)."""
    B, C = raw_scores.shape
    num_negative = C - 1                       # num_positive == 1
    N = B * C

    # real slots per row = 1 positive + clamped #available hard negatives
    num_real = 1 + jnp.clip(num_neg_available.astype(jnp.int32), 0, num_negative)
    aux_dtype = jnp.int8 if C <= 126 else jnp.int32
    # rem[i, c] = num_real[i] - c   ->   slot is a pad/fake ctx iff rem <= 0
    rem = (num_real[:, None] - jnp.arange(C, dtype=jnp.int32)[None, :]).astype(aux_dtype)

    # Flattened, lane-dense layout. reshape of contiguous [B, C] is free;
    # a pad copy only happens when B*C is not already 128-aligned.
    N_pad = _round_up(N, _LANES)
    scores_flat = raw_scores.reshape(-1)
    rem_flat = rem.reshape(-1)
    if N_pad != N:
        scores_flat = jnp.pad(scores_flat, (0, N_pad - N))
        rem_flat = jnp.pad(rem_flat, (0, N_pad - N))
    rows = N_pad // _LANES
    x2d = scores_flat.reshape(rows, _LANES)
    rem2d = rem_flat.reshape(rows, _LANES)

    block_rows = rows if rows <= _BLOCK_ROWS else _BLOCK_ROWS
    grid = (pl.cdiv(rows, block_rows),)

    alias = {1: 1} if x2d.dtype == jnp.float32 else {}
    in_itemsize = jnp.dtype(x2d.dtype).itemsize
    aux_itemsize = jnp.dtype(aux_dtype).itemsize
    cost = pl.CostEstimate(
        flops=2 * N_pad,                                   # compare + select
        transcendentals=0,
        bytes_accessed=N_pad * (in_itemsize + aux_itemsize + 4 + 1),
    )

    mask2d, out2d = pl.pallas_call(
        _dpr_collate_kernel,
        out_shape=(
            jax.ShapeDtypeStruct((rows, _LANES), jnp.int8),
            jax.ShapeDtypeStruct((rows, _LANES), jnp.float32),
        ),
        grid=grid,
        in_specs=[
            pl.BlockSpec((block_rows, _LANES), lambda i: (i, 0)),
            pl.BlockSpec((block_rows, _LANES), lambda i: (i, 0)),
        ],
        out_specs=(
            pl.BlockSpec((block_rows, _LANES), lambda i: (i, 0)),
            pl.BlockSpec((block_rows, _LANES), lambda i: (i, 0)),
        ),
        input_output_aliases=alias,
        cost_estimate=cost,
        compiler_params=pltpu.CompilerParams(
            dimension_semantics=("parallel",)),
    )(rem2d, x2d)

    # outputs are already in row-major [B*C] order: no transposes needed
    scores = out2d.reshape(-1)[:N].reshape(B, C)                  # (B, C) f32
    ctx_mask = mask2d.reshape(-1)[:N] != 0                        # (B*C,) bool

    # positive_ctx_indices[i] = number of contexts emitted before row i = i * C
    # TODO(synk): PyTorch returns torch.long (int64); int32 used here (JAX x64
    # disabled), exact for any realistic B*C < 2^31.
    pos_ctx_indices = jnp.arange(B, dtype=jnp.int32) * C
    return pos_ctx_indices, scores, ctx_mask


def dpr_transform_forward(num_neg_available, raw_scores, key,
                          query_seq_len=8, ctx_seq_len=8, vocab_size=1000):
    """Emulates DPRTransform.forward for stage='train' with num_positive=1.

    TODO(synk): JSON row parsing, relevance-weighted np.random.choice context
    sampling and the HF tokenizer (text_transform) are string/host-side ops
    with no Pallas equivalent; token ids are synthesized deterministically here.
    """
    B, C = raw_scores.shape
    kq, kc = jax.random.split(key)
    # stand-ins for tokenizer output ("query_ids" / "contexts_ids")
    query_ids = jax.random.randint(kq, (B, query_seq_len), 0, vocab_size, dtype=jnp.int32)
    contexts_ids = jax.random.randint(kc, (B * C, ctx_seq_len), 0, vocab_size, dtype=jnp.int32)

    pos_ctx_indices, scores, ctx_mask = dpr_collate(num_neg_available, raw_scores)

    return {
        "query_ids": query_ids,
        "contexts_ids": contexts_ids,
        "pos_ctx_indices": pos_ctx_indices,   # int32 (torch.long equivalent)
        "scores": scores,                     # float32 [B, 1 + num_negative]
        "ctx_mask": ctx_mask,                 # bool   [B * (1 + num_negative)]
    }


if __name__ == "__main__":
    key = jax.random.PRNGKey(0)

    # Small, module-consistent shapes: batch of 2 questions, num_positive=1,
    # num_negative=7  ->  C = 8 context slots per question.
    B = 2
    num_negative = 7
    C = 1 + num_negative

    # Row 0 has 7 real hard negatives (no padding); row 1 has only 3 (4 pads).
    num_neg_available = jnp.array([7, 3], dtype=jnp.int32)

    # Deterministic "scores" for every slot (pad slots will be zeroed in-kernel).
    raw_scores = jax.random.uniform(jax.random.fold_in(key, 1), (B, C), dtype=jnp.float32) * 10.0

    out = dpr_transform_forward(num_neg_available, raw_scores, key)
    jax.block_until_ready(out)

    # light sanity checks of the forward semantics
    assert out["pos_ctx_indices"].tolist() == [0, C]
    mask = out["ctx_mask"].reshape(B, C)
    assert not bool(mask[0].any())                       # row 0: no fake ctxs
    assert mask[1].tolist() == [False] * 4 + [True] * 4  # row 1: 4 fake ctxs
    assert float(jnp.abs(jnp.where(mask, out["scores"], 0.0)).sum()) == 0.0

    print("KERNEL_OK")
</pallas_src>

<mosaic_0001>
module attributes {stable_mosaic.version = 11 : i64} {
  func.func @_dpr_collate_kernel(%arg0: i32, %arg1: memref<1x128xi8, #tpu.memory_space<vmem>>, %arg2: memref<1x128xf32, #tpu.memory_space<vmem>>, %arg3: memref<1x128xi8, #tpu.memory_space<vmem>>, %arg4: memref<1x128xf32, #tpu.memory_space<vmem>>) attributes {dimension_semantics = [#tpu.dimension_semantics<parallel>], iteration_bounds = array<i64: 1>, scalar_prefetch = 0 : i64, scratch_operands = 0 : i64, tpu.core_type = #tpu.core_type<tc>, window_params = [{transform_indices = @transform_0, window_bounds = array<i64: 1, 128>}, {transform_indices = @transform_1, window_bounds = array<i64: 1, 128>}, {transform_indices = @transform_2, window_bounds = array<i64: 1, 128>}, {transform_indices = @transform_3, window_bounds = array<i64: 1, 128>}]} {
    %c0 = arith.constant 0 : index
    %c0_0 = arith.constant 0 : index
    %0 = vector.load %arg1[%c0, %c0_0] : memref<1x128xi8, #tpu.memory_space<vmem>>, vector<1x128xi8>
    %1 = arith.extsi %0 : vector<1x128xi8> to vector<1x128xi32>
    %c0_i32 = arith.constant 0 : i32
    %2 = vector.broadcast %c0_i32 : i32 to vector<1x128xi32>
    %3 = arith.cmpi sle, %1, %2 : vector<1x128xi32>
    %4 = arith.extui %3 : vector<1x128xi1> to vector<1x128xi8>
    %c0_1 = arith.constant 0 : index
    %c0_2 = arith.constant 0 : index
    %5 = vector.load %arg3[%c0_1, %c0_2] : memref<1x128xi8, #tpu.memory_space<vmem>>, vector<1x128xi8>
    tpu.vector_store %arg3[%c0_1, %c0_2], %4 {strides = array<i32>} : memref<1x128xi8, #tpu.memory_space<vmem>>, vector<1x128xi8>,
    %c0_3 = arith.constant 0 : index
    %c0_4 = arith.constant 0 : index
    %6 = vector.load %arg2[%c0_3, %c0_4] : memref<1x128xf32, #tpu.memory_space<vmem>>, vector<1x128xf32>
    %cst = arith.constant 0.000000e+00 : f32
    %7 = vector.broadcast %cst : f32 to vector<1x128xf32>
    %8 = arith.select %3, %7, %6 : vector<1x128xi1>, vector<1x128xf32>
    %c0_5 = arith.constant 0 : index
    %c0_6 = arith.constant 0 : index
    %9 = vector.load %arg4[%c0_5, %c0_6] : memref<1x128xf32, #tpu.memory_space<vmem>>, vector<1x128xf32>
    tpu.vector_store %arg4[%c0_5, %c0_6], %8 {strides = array<i32>} : memref<1x128xf32, #tpu.memory_space<vmem>>, vector<1x128xf32>,
    return
  }
  func.func @transform_0(%arg0: i32) -> (i32, i32) {
    %c0_i32 = arith.constant 0 : i32
    %c0_i32_0 = arith.constant 0 : i32
    return %arg0, %c0_i32 : i32, i32
  }
  func.func @transform_1(%arg0: i32) -> (i32, i32) {
    %c0_i32 = arith.constant 0 : i32
    %c0_i32_0 = arith.constant 0 : i32
    return %arg0, %c0_i32 : i32, i32
  }
  func.func @transform_2(%arg0: i32) -> (i32, i32) {
    %c0_i32 = arith.constant 0 : i32
    %c0_i32_0 = arith.constant 0 : i32
    return %arg0, %c0_i32 : i32, i32
  }
  func.func @transform_3(%arg0: i32) -> (i32, i32) {
    %c0_i32 = arith.constant 0 : i32
    %c0_i32_0 = arith.constant 0 : i32
    return %arg0, %c0_i32 : i32, i32
  }
}

</mosaic_0001>

<bundles_post_ra>
// kernel: dpr_collate.1
= control target key start
LH: loop header
LB: loop body
LE: loop exit
PB: predicated region body
PF: predicated region fallthrough
CT: control target
= control target key end

     0   :  { %v41_v3 = vmov 0   ;;  %vm23_vm1 = vcmask 1040384   ;;  %vm24_vm2 = vsmask.f32 0  ;;  %s77_s0 = inlined_call_operand.vmem [shape: s8[1,128], index: 0, kind: input, shape index: {}]   ;;  %s78_s1 = inlined_call_operand.vmem [shape: f32[1,128], index: 1, kind: input, shape index: {}, may-alias: {1,3}]   ;;  %s79_s3 = inlined_call_operand.vmem [shape: f32[1,128], index: 3, kind: output, shape index: {1}, may-alias: {1,3}]   ;;  %s80_s2 = inlined_call_operand.vmem [shape: s8[1,128], index: 2, kind: output, shape index: {0}]  }
   0x1   :  { %v15_v0 = vld [vmem:[%s77_s0] sm:$0x1]  ;;  %vm25_vm3 = vmand %vm23_vm1, %vm24_vm2 }
   0x2   :  { %v16_v1 = vunpack.c.0.s8 %v15_v0  ;;  %v29_v2 = vld [vmem:[%s78_s1] sm:$0x1] }
   0x3   :  { %v26_v8 = vld [vmem:[%s80_s2] sm:$0x1] }
   0x4   :  { %vm17_vm0 = vcmp.le.s32.totalorder %v16_v1, 0 }
   0x5   :  { %v18_v4 = vsel %vm17_vm0, 1, %v41_v3  ;;  %v30_v5 = vsel %vm17_vm0, 0.0, %v29_v2 }
   0x6   :  { %v19_v6 = vpack.c.b16 %v18_v4, %v18_v4  ;;  %31 = vst [vmem:[%s79_s3] sm:$0x1] %v30_v5 }
   0x8   :  { %v20_v7 = vpack.c.b8 %v19_v6, %v19_v6 }
   0xa   :  { %vm21_vm4 = vnez %v20_v7 }
   0xb   :  { %v22_v9 = vsel %vm21_vm4, 16843009, %v41_v3 }
   0xc   :  { %v27_v10 = vsel %vm25_vm3, %v22_v9, %v26_v8 }
   0xd   :  { %28 = vst [vmem:[%s80_s2] sm:$0x1] %v27_v10 }

</bundles_post_ra>
